<compile_context>
chip_gen: v7x
topology: tpu7x:2x2x1
jax: 0.10.0
libtpu: 0.0.40
codegen_flags: <defaults>
</compile_context>

<pallas_src>
import jax
import jax.numpy as jnp
from jax.experimental import pallas as pl
from jax.experimental.pallas import tpu as pltpu


# ---------------------------------------------------------------------------
# Small helpers
# ---------------------------------------------------------------------------

def _cdiv(a, b):
    return (a + b - 1) // b


def _round_up(a, b):
    return _cdiv(a, b) * b


def _pad2(a, rows, cols):
    """Zero-pad a 2-D array to (rows, cols), top-left aligned, f32."""
    out = jnp.zeros((rows, cols), jnp.float32)
    return out.at[: a.shape[0], : a.shape[1]].set(a.astype(jnp.float32))


# ---------------------------------------------------------------------------
# Fused kernel: all residual blocks + final linear in one body.
# Layer loop is unrolled at trace time (layer count is static).
# ---------------------------------------------------------------------------

def _fused_classifier_kernel(x_ref, ws_ref, bs_ref, rs_ref, rbs_ref,
                             wo_ref, bo_ref, o_ref):
    x = x_ref[...]                              # (TB, D) activation, stays on-chip
    n_layers = ws_ref.shape[0]
    for i in range(n_layers):                   # static Python unroll
        # relu( x @ W'_i + b'_i )  -- BN already folded into W'/b'
        h = jnp.dot(x, ws_ref[i], preferred_element_type=jnp.float32) + bs_ref[i]
        h = jnp.maximum(h, 0.0)
        # residual: projection Linear, or padded identity matrix (exact in f32)
        r = jnp.dot(x, rs_ref[i], preferred_element_type=jnp.float32) + rbs_ref[i]
        x = h + r
    # final Linear
    o_ref[...] = (jnp.dot(x, wo_ref[...], preferred_element_type=jnp.float32)
                  + bo_ref[...]).astype(o_ref.dtype)


# ---------------------------------------------------------------------------
# Wrapper
# ---------------------------------------------------------------------------

def base_classifier_forward(x, packed, num_classes):
    ws, bs, rs, rbs, wo, bo = packed
    B, in_sz = x.shape
    L, D, _ = ws.shape

    # batch tiling: one lane-aligned tile at small B, 256-row tiles otherwise
    TB = min(256, _round_up(B, 8))
    Bp = _round_up(B, TB)
    n_tiles = Bp // TB

    x_pad = jnp.zeros((Bp, D), jnp.float32).at[:B, :in_sz].set(x)

    y_pad = pl.pallas_call(
        _fused_classifier_kernel,
        out_shape=jax.ShapeDtypeStruct((Bp, D), jnp.float32),
        grid=(n_tiles,),
        in_specs=[
            pl.BlockSpec((TB, D), lambda i: (i, 0)),        # x batch tile
            pl.BlockSpec((L, D, D), lambda i: (0, 0, 0)),   # folded layer weights (VMEM-resident)
            pl.BlockSpec((L, 1, D), lambda i: (0, 0, 0)),   # folded layer biases
            pl.BlockSpec((L, D, D), lambda i: (0, 0, 0)),   # residual weights (proj or identity)
            pl.BlockSpec((L, 1, D), lambda i: (0, 0, 0)),   # residual biases
            pl.BlockSpec((D, D), lambda i: (0, 0)),         # output-layer weight
            pl.BlockSpec((1, D), lambda i: (0, 0)),         # output-layer bias
        ],
        out_specs=pl.BlockSpec((TB, D), lambda i: (i, 0)),
        compiler_params=pltpu.CompilerParams(
            dimension_semantics=("parallel",)),
    )(x_pad, ws, bs, rs, rbs, wo, bo)

    return y_pad[:B, :num_classes]


# ---------------------------------------------------------------------------
# Parameter construction: raw (PyTorch-like) params, then fold + pad + pack.
# ---------------------------------------------------------------------------

def make_raw_params(key, latent_sz, hidden_layers, num_classes):
    sizes = [latent_sz] + list(hidden_layers)
    blocks = []
    for i in range(1, len(sizes)):
        in_sz, out_sz = sizes[i - 1], sizes[i]
        key, k1, k2, k3, k4, k5, k6, k7, k8 = jax.random.split(key, 9)
        p = {
            "w": 0.1 * jax.random.normal(k1, (in_sz, out_sz), jnp.float32),
            "b": 0.1 * jax.random.normal(k2, (out_sz,), jnp.float32),
            # BatchNorm1d params + running stats (eval mode)
            "gamma": 1.0 + 0.05 * jax.random.normal(k3, (out_sz,), jnp.float32),
            "beta": 0.05 * jax.random.normal(k4, (out_sz,), jnp.float32),
            "mean": 0.05 * jax.random.normal(k5, (out_sz,), jnp.float32),
            "var": 1.0 + 0.1 * jax.random.uniform(k6, (out_sz,), jnp.float32),
        }
        if in_sz != out_sz:   # projection residual (nn.Linear), else nn.Identity
            p["wr"] = 0.1 * jax.random.normal(k7, (in_sz, out_sz), jnp.float32)
            p["br"] = 0.1 * jax.random.normal(k8, (out_sz,), jnp.float32)
        blocks.append(p)
    key, k1, k2 = jax.random.split(key, 3)
    out_w = 0.1 * jax.random.normal(k1, (hidden_layers[-1], num_classes), jnp.float32)
    out_b = 0.1 * jax.random.normal(k2, (num_classes,), jnp.float32)
    return blocks, out_w, out_b


def fold_and_pad_params(raw_blocks, out_w, out_b, D, eps=1e-5):
    """Fold eval-mode BN into weights/bias, pad all dims to D, stack layers."""
    ws, bs, rs, rbs = [], [], [], []
    for p in raw_blocks:
        scale = p["gamma"] / jnp.sqrt(p["var"] + eps)
        shift = p["beta"] - p["mean"] * scale
        w_f = p["w"] * scale[None, :]          # fold BN scale into columns
        b_f = p["b"] * scale + shift           # fold bias + BN shift
        ws.append(_pad2(w_f, D, D))
        bs.append(_pad2(b_f[None, :], 1, D))
        if "wr" in p:
            rs.append(_pad2(p["wr"], D, D))
            rbs.append(_pad2(p["br"][None, :], 1, D))
        else:
            # identity residual -> padded identity matrix (exact in f32)
            rs.append(jnp.eye(D, dtype=jnp.float32))
            rbs.append(jnp.zeros((1, D), jnp.float32))
    ws = jnp.stack(ws)        # (L, D, D)
    bs = jnp.stack(bs)        # (L, 1, D)
    rs = jnp.stack(rs)        # (L, D, D)
    rbs = jnp.stack(rbs)      # (L, 1, D)
    wo = _pad2(out_w, D, D)   # (D, D)
    bo = _pad2(out_b[None, :], 1, D)
    return ws, bs, rs, rbs, wo, bo


# ---------------------------------------------------------------------------
# Pure-JAX reference (un-folded BN, eval mode) for correctness check.
# ---------------------------------------------------------------------------

def reference_forward(x, raw_blocks, out_w, out_b, eps=1e-5):
    for p in raw_blocks:
        h = x @ p["w"] + p["b"]
        h = (h - p["mean"]) * (p["gamma"] / jnp.sqrt(p["var"] + eps)) + p["beta"]
        h = jnp.maximum(h, 0.0)
        res = (x @ p["wr"] + p["br"]) if "wr" in p else x
        x = h + res
    return x @ out_w + out_b


if __name__ == "__main__":
    # BaseClassifier(latent_sz, hidden_layers, num_classes) at small shapes.
    # hidden_layers includes a 64->64 block to exercise the identity-residual path.
    batch = 8
    latent_sz = 32
    hidden_layers = [64, 64, 32]
    num_classes = 8
    bn_eps = 1e-5

    key = jax.random.PRNGKey(0)
    key, kx = jax.random.split(key)
    x = jax.random.normal(kx, (batch, latent_sz), jnp.float32)

    raw_blocks, out_w, out_b = make_raw_params(key, latent_sz, hidden_layers, num_classes)

    # Pad every feature dim to a multiple of 128 lanes.
    D = 128 * _cdiv(max([latent_sz] + hidden_layers + [num_classes]), 128)
    packed = fold_and_pad_params(raw_blocks, out_w, out_b, D, eps=bn_eps)

    y = base_classifier_forward(x, packed, num_classes)
    y = jax.block_until_ready(y)

    y_ref = reference_forward(x, raw_blocks, out_w, out_b, eps=bn_eps)
    assert y.shape == (batch, num_classes)
    assert jnp.allclose(y, y_ref, atol=5e-4, rtol=5e-4), "mismatch vs reference"

    print("KERNEL_OK")
</pallas_src>

<mosaic_0001>
module attributes {stable_mosaic.version = 11 : i64} {
  func.func @_fused_classifier_kernel(%arg0: i32, %arg1: memref<8x128xf32, #tpu.memory_space<vmem>>, %arg2: memref<3x128x128xf32, #tpu.memory_space<vmem>>, %arg3: memref<3x1x128xf32, #tpu.memory_space<vmem>>, %arg4: memref<3x128x128xf32, #tpu.memory_space<vmem>>, %arg5: memref<3x1x128xf32, #tpu.memory_space<vmem>>, %arg6: memref<128x128xf32, #tpu.memory_space<vmem>>, %arg7: memref<1x128xf32, #tpu.memory_space<vmem>>, %arg8: memref<8x128xf32, #tpu.memory_space<vmem>>) attributes {dimension_semantics = [#tpu.dimension_semantics<parallel>], iteration_bounds = array<i64: 1>, scalar_prefetch = 0 : i64, scratch_operands = 0 : i64, tpu.core_type = #tpu.core_type<tc>, window_params = [{transform_indices = @transform_0, window_bounds = array<i64: 8, 128>}, {pipeline_mode = #tpu.pipeline_mode<synchronous>, transform_indices = @transform_1, window_bounds = array<i64: 3, 128, 128>}, {pipeline_mode = #tpu.pipeline_mode<synchronous>, transform_indices = @transform_2, window_bounds = array<i64: 3, 1, 128>}, {pipeline_mode = #tpu.pipeline_mode<synchronous>, transform_indices = @transform_3, window_bounds = array<i64: 3, 128, 128>}, {pipeline_mode = #tpu.pipeline_mode<synchronous>, transform_indices = @transform_4, window_bounds = array<i64: 3, 1, 128>}, {pipeline_mode = #tpu.pipeline_mode<synchronous>, transform_indices = @transform_5, window_bounds = array<i64: 128, 128>}, {pipeline_mode = #tpu.pipeline_mode<synchronous>, transform_indices = @transform_6, window_bounds = array<i64: 1, 128>}, {transform_indices = @transform_7, window_bounds = array<i64: 8, 128>}]} {
    %c0 = arith.constant 0 : index
    %c0_0 = arith.constant 0 : index
    %0 = vector.load %arg1[%c0, %c0_0] : memref<8x128xf32, #tpu.memory_space<vmem>>, vector<8x128xf32>
    %c0_1 = arith.constant 0 : index
    %c0_2 = arith.constant 0 : index
    %c0_3 = arith.constant 0 : index
    %1 = vector.load %arg2[%c0_1, %c0_2, %c0_3] : memref<3x128x128xf32, #tpu.memory_space<vmem>>, vector<1x128x128xf32>
    %2 = vector.shape_cast %1 : vector<1x128x128xf32> to vector<128x128xf32>
    %cst = arith.constant dense<0.000000e+00> : vector<8x128xf32>
    %3 = tpu.matmul %0, %2, %cst {dimension_numbers = #tpu.dot_dimension_numbers<[1], [0], [0], [1], [0, 0, 1, 1], [], []>} : vector<8x128xf32>, vector<128x128xf32>, vector<8x128xf32> -> vector<8x128xf32>
    %c0_4 = arith.constant 0 : index
    %c0_5 = arith.constant 0 : index
    %c0_6 = arith.constant 0 : index
    %4 = vector.load %arg3[%c0_4, %c0_5, %c0_6] : memref<3x1x128xf32, #tpu.memory_space<vmem>>, vector<1x1x128xf32>
    %5 = vector.shape_cast %4 : vector<1x1x128xf32> to vector<1x128xf32>
    %6 = vector.broadcast %5 : vector<1x128xf32> to vector<8x128xf32>
    %7 = arith.addf %3, %6 : vector<8x128xf32>
    %cst_7 = arith.constant 0.000000e+00 : f32
    %8 = vector.broadcast %cst_7 : f32 to vector<8x128xf32>
    %9 = arith.maximumf %7, %8 : vector<8x128xf32>
    %c0_8 = arith.constant 0 : index
    %c0_9 = arith.constant 0 : index
    %c0_10 = arith.constant 0 : index
    %10 = vector.load %arg4[%c0_8, %c0_9, %c0_10] : memref<3x128x128xf32, #tpu.memory_space<vmem>>, vector<1x128x128xf32>
    %11 = vector.shape_cast %10 : vector<1x128x128xf32> to vector<128x128xf32>
    %cst_11 = arith.constant dense<0.000000e+00> : vector<8x128xf32>
    %12 = tpu.matmul %0, %11, %cst_11 {dimension_numbers = #tpu.dot_dimension_numbers<[1], [0], [0], [1], [0, 0, 1, 1], [], []>} : vector<8x128xf32>, vector<128x128xf32>, vector<8x128xf32> -> vector<8x128xf32>
    %c0_12 = arith.constant 0 : index
    %c0_13 = arith.constant 0 : index
    %c0_14 = arith.constant 0 : index
    %13 = vector.load %arg5[%c0_12, %c0_13, %c0_14] : memref<3x1x128xf32, #tpu.memory_space<vmem>>, vector<1x1x128xf32>
    %14 = vector.shape_cast %13 : vector<1x1x128xf32> to vector<1x128xf32>
    %15 = vector.broadcast %14 : vector<1x128xf32> to vector<8x128xf32>
    %16 = arith.addf %12, %15 : vector<8x128xf32>
    %17 = arith.addf %9, %16 : vector<8x128xf32>
    %c1 = arith.constant 1 : index
    %c0_15 = arith.constant 0 : index
    %c0_16 = arith.constant 0 : index
    %18 = vector.load %arg2[%c1, %c0_15, %c0_16] : memref<3x128x128xf32, #tpu.memory_space<vmem>>, vector<1x128x128xf32>
    %19 = vector.shape_cast %18 : vector<1x128x128xf32> to vector<128x128xf32>
    %cst_17 = arith.constant dense<0.000000e+00> : vector<8x128xf32>
    %20 = tpu.matmul %17, %19, %cst_17 {dimension_numbers = #tpu.dot_dimension_numbers<[1], [0], [0], [1], [0, 0, 1, 1], [], []>} : vector<8x128xf32>, vector<128x128xf32>, vector<8x128xf32> -> vector<8x128xf32>
    %c1_18 = arith.constant 1 : index
    %c0_19 = arith.constant 0 : index
    %c0_20 = arith.constant 0 : index
    %21 = vector.load %arg3[%c1_18, %c0_19, %c0_20] : memref<3x1x128xf32, #tpu.memory_space<vmem>>, vector<1x1x128xf32>
    %22 = vector.shape_cast %21 : vector<1x1x128xf32> to vector<1x128xf32>
    %23 = vector.broadcast %22 : vector<1x128xf32> to vector<8x128xf32>
    %24 = arith.addf %20, %23 : vector<8x128xf32>
    %cst_21 = arith.constant 0.000000e+00 : f32
    %25 = vector.broadcast %cst_21 : f32 to vector<8x128xf32>
    %26 = arith.maximumf %24, %25 : vector<8x128xf32>
    %c1_22 = arith.constant 1 : index
    %c0_23 = arith.constant 0 : index
    %c0_24 = arith.constant 0 : index
    %27 = vector.load %arg4[%c1_22, %c0_23, %c0_24] : memref<3x128x128xf32, #tpu.memory_space<vmem>>, vector<1x128x128xf32>
    %28 = vector.shape_cast %27 : vector<1x128x128xf32> to vector<128x128xf32>
    %cst_25 = arith.constant dense<0.000000e+00> : vector<8x128xf32>
    %29 = tpu.matmul %17, %28, %cst_25 {dimension_numbers = #tpu.dot_dimension_numbers<[1], [0], [0], [1], [0, 0, 1, 1], [], []>} : vector<8x128xf32>, vector<128x128xf32>, vector<8x128xf32> -> vector<8x128xf32>
    %c1_26 = arith.constant 1 : index
    %c0_27 = arith.constant 0 : index
    %c0_28 = arith.constant 0 : index
    %30 = vector.load %arg5[%c1_26, %c0_27, %c0_28] : memref<3x1x128xf32, #tpu.memory_space<vmem>>, vector<1x1x128xf32>
    %31 = vector.shape_cast %30 : vector<1x1x128xf32> to vector<1x128xf32>
    %32 = vector.broadcast %31 : vector<1x128xf32> to vector<8x128xf32>
    %33 = arith.addf %29, %32 : vector<8x128xf32>
    %34 = arith.addf %26, %33 : vector<8x128xf32>
    %c2 = arith.constant 2 : index
    %c0_29 = arith.constant 0 : index
    %c0_30 = arith.constant 0 : index
    %35 = vector.load %arg2[%c2, %c0_29, %c0_30] : memref<3x128x128xf32, #tpu.memory_space<vmem>>, vector<1x128x128xf32>
    %36 = vector.shape_cast %35 : vector<1x128x128xf32> to vector<128x128xf32>
    %cst_31 = arith.constant dense<0.000000e+00> : vector<8x128xf32>
    %37 = tpu.matmul %34, %36, %cst_31 {dimension_numbers = #tpu.dot_dimension_numbers<[1], [0], [0], [1], [0, 0, 1, 1], [], []>} : vector<8x128xf32>, vector<128x128xf32>, vector<8x128xf32> -> vector<8x128xf32>
    %c2_32 = arith.constant 2 : index
    %c0_33 = arith.constant 0 : index
    %c0_34 = arith.constant 0 : index
    %38 = vector.load %arg3[%c2_32, %c0_33, %c0_34] : memref<3x1x128xf32, #tpu.memory_space<vmem>>, vector<1x1x128xf32>
    %39 = vector.shape_cast %38 : vector<1x1x128xf32> to vector<1x128xf32>
    %40 = vector.broadcast %39 : vector<1x128xf32> to vector<8x128xf32>
    %41 = arith.addf %37, %40 : vector<8x128xf32>
    %cst_35 = arith.constant 0.000000e+00 : f32
    %42 = vector.broadcast %cst_35 : f32 to vector<8x128xf32>
    %43 = arith.maximumf %41, %42 : vector<8x128xf32>
    %c2_36 = arith.constant 2 : index
    %c0_37 = arith.constant 0 : index
    %c0_38 = arith.constant 0 : index
    %44 = vector.load %arg4[%c2_36, %c0_37, %c0_38] : memref<3x128x128xf32, #tpu.memory_space<vmem>>, vector<1x128x128xf32>
    %45 = vector.shape_cast %44 : vector<1x128x128xf32> to vector<128x128xf32>
    %cst_39 = arith.constant dense<0.000000e+00> : vector<8x128xf32>
    %46 = tpu.matmul %34, %45, %cst_39 {dimension_numbers = #tpu.dot_dimension_numbers<[1], [0], [0], [1], [0, 0, 1, 1], [], []>} : vector<8x128xf32>, vector<128x128xf32>, vector<8x128xf32> -> vector<8x128xf32>
    %c2_40 = arith.constant 2 : index
    %c0_41 = arith.constant 0 : index
    %c0_42 = arith.constant 0 : index
    %47 = vector.load %arg5[%c2_40, %c0_41, %c0_42] : memref<3x1x128xf32, #tpu.memory_space<vmem>>, vector<1x1x128xf32>
    %48 = vector.shape_cast %47 : vector<1x1x128xf32> to vector<1x128xf32>
    %49 = vector.broadcast %48 : vector<1x128xf32> to vector<8x128xf32>
    %50 = arith.addf %46, %49 : vector<8x128xf32>
    %51 = arith.addf %43, %50 : vector<8x128xf32>
    %c0_43 = arith.constant 0 : index
    %c0_44 = arith.constant 0 : index
    %52 = vector.load %arg6[%c0_43, %c0_44] : memref<128x128xf32, #tpu.memory_space<vmem>>, vector<128x128xf32>
    %cst_45 = arith.constant dense<0.000000e+00> : vector<8x128xf32>
    %53 = tpu.matmul %51, %52, %cst_45 {dimension_numbers = #tpu.dot_dimension_numbers<[1], [0], [0], [1], [0, 0, 1, 1], [], []>} : vector<8x128xf32>, vector<128x128xf32>, vector<8x128xf32> -> vector<8x128xf32>
    %c0_46 = arith.constant 0 : index
    %c0_47 = arith.constant 0 : index
    %54 = vector.load %arg7[%c0_46, %c0_47] : memref<1x128xf32, #tpu.memory_space<vmem>>, vector<1x128xf32>
    %55 = vector.broadcast %54 : vector<1x128xf32> to vector<8x128xf32>
    %56 = arith.addf %53, %55 : vector<8x128xf32>
    %c0_48 = arith.constant 0 : index
    %c0_49 = arith.constant 0 : index
    %57 = vector.load %arg8[%c0_48, %c0_49] : memref<8x128xf32, #tpu.memory_space<vmem>>, vector<8x128xf32>
    tpu.vector_store %arg8[%c0_48, %c0_49], %56 {strides = array<i32>} : memref<8x128xf32, #tpu.memory_space<vmem>>, vector<8x128xf32>,
    return
  }
  func.func @transform_0(%arg0: i32) -> (i32, i32) {
    %c0_i32 = arith.constant 0 : i32
    %c0_i32_0 = arith.constant 0 : i32
    return %arg0, %c0_i32 : i32, i32
  }
  func.func @transform_1(%arg0: i32) -> (i32, i32, i32) {
    %c0_i32 = arith.constant 0 : i32
    %c0_i32_0 = arith.constant 0 : i32
    %c0_i32_1 = arith.constant 0 : i32
    %c0_i32_2 = arith.constant 0 : i32
    return %c0_i32, %c0_i32_0, %c0_i32_1 : i32, i32, i32
  }
  func.func @transform_2(%arg0: i32) -> (i32, i32, i32) {
    %c0_i32 = arith.constant 0 : i32
    %c0_i32_0 = arith.constant 0 : i32
    %c0_i32_1 = arith.constant 0 : i32
    %c0_i32_2 = arith.constant 0 : i32
    return %c0_i32, %c0_i32_0, %c0_i32_1 : i32, i32, i32
  }
  func.func @transform_3(%arg0: i32) -> (i32, i32, i32) {
    %c0_i32 = arith.constant 0 : i32
    %c0_i32_0 = arith.constant 0 : i32
    %c0_i32_1 = arith.constant 0 : i32
    %c0_i32_2 = arith.constant 0 : i32
    return %c0_i32, %c0_i32_0, %c0_i32_1 : i32, i32, i32
  }
  func.func @transform_4(%arg0: i32) -> (i32, i32, i32) {
    %c0_i32 = arith.constant 0 : i32
    %c0_i32_0 = arith.constant 0 : i32
    %c0_i32_1 = arith.constant 0 : i32
    %c0_i32_2 = arith.constant 0 : i32
    return %c0_i32, %c0_i32_0, %c0_i32_1 : i32, i32, i32
  }
  func.func @transform_5(%arg0: i32) -> (i32, i32) {
    %c0_i32 = arith.constant 0 : i32
    %c0_i32_0 = arith.constant 0 : i32
    %c0_i32_1 = arith.constant 0 : i32
    return %c0_i32, %c0_i32_0 : i32, i32
  }
  func.func @transform_6(%arg0: i32) -> (i32, i32) {
    %c0_i32 = arith.constant 0 : i32
    %c0_i32_0 = arith.constant 0 : i32
    %c0_i32_1 = arith.constant 0 : i32
    return %c0_i32, %c0_i32_0 : i32, i32
  }
  func.func @transform_7(%arg0: i32) -> (i32, i32) {
    %c0_i32 = arith.constant 0 : i32
    %c0_i32_0 = arith.constant 0 : i32
    return %arg0, %c0_i32 : i32, i32
  }
}

</mosaic_0001>

<bundles_post_ra>
// kernel: tpu_custom_call.1
= control target key start
LH: loop header
LB: loop body
LE: loop exit
PB: predicated region body
PF: predicated region fallthrough
CT: control target
= control target key end

     0   :  { %12 = vsyncpa [#allocation3], 0  ;;  %s1645_s0 = inlined_call_operand.hbm [shape: f32[8,128], index: 0, kind: input, shape index: {}]   ;;  %s1646_s1 = inlined_call_operand.hbm [shape: f32[3,128,128], index: 1, kind: input, shape index: {}]   ;;  %s1647_s2 = inlined_call_operand.vmem [shape: f32[3,1,128], index: 2, kind: input, shape index: {}]   ;;  %s1648_s3 = inlined_call_operand.hbm [shape: f32[3,128,128], index: 3, kind: input, shape index: {}]   ;;  %s1649_s4 = inlined_call_operand.vmem [shape: f32[3,1,128], index: 4, kind: input, shape index: {}]   ;;  %s1650_s5 = inlined_call_operand.hbm [shape: f32[128,128], index: 5, kind: input, shape index: {}]   ;;  %s1651_s6 = inlined_call_operand.vmem [shape: f32[1,128], index: 6, kind: input, shape index: {}]   ;;  %s1652_s7 = inlined_call_operand.hbm [shape: f32[8,128], index: 7, kind: output, shape index: {}]  }
   0x1   :  { %13 = vsyncpa [#allocation6], 0 }
   0x2   :  { %14 = vsyncpa [#allocation9], 0 }
   0x3   :  { %15 = vsyncpa [#allocation4], 0  ;;  %s1435_s24 = smov [#allocation5]   ;;  %s1317_s28 = scalar_lea.hbm %s1646_s1, 6144 }
   0x4   :  { %s31_s25 = sshll.u32 %s1435_s24, 4  ;;  %p1318_p0 = scmp.ne.s32.totalorder %s1646_s1, %s1317_s28  ;;  %s32_s25 = int_to_ptr.vmem [resolvable:$true] %s31_s25 }
   0x5   :  { %p1321_p1 = scmp.lt.u32.totalorder %s1317_s28, %s1646_s1 }
   0x7   :  { %p1323_p2 = pnand %p1321_p1, %p1318_p0 }
   0x9   :  { %1326 = shalt.err (!%p1323_p2)
}
   0xa   :  { %s1327_s10 = scalar_lea.vmem %s32_s25, 6144  ;;  %p1332_p4 = scmp.lt.s32.totalorder %s32_s25, %s32_s25 }
   0xb   :  { %p1328_p3 = scmp.ne.s32.totalorder %s32_s25, %s1327_s10  ;;  %p1333_p5 = scmp.lt.s32.totalorder %s1327_s10, %s1327_s10 }
   0xd   :  { %p1334_p6 = por %p1333_p5, %p1332_p4 }
   0xf   :  { %p1335_p7 = pnand %p1334_p6, %p1328_p3 }
  0x11   :  { %1338 = shalt.err (!%p1335_p7)
}
  0x12   :  { %s1436_s11 = smov 128   ;;  %s1437_s12 = smov 8  }
  0x13   :  { %37 = dma.hbm_to_vmem [thread:$0]  %s1646_s1, 6144, %s32_s25, [#allocation6], %s1436_s11, %s1436_s11, %s1437_s12  }
  0x14   :  { %s1438_s15 = smov [#allocation2]   ;;  %s1439_s17 = smov [#allocation7]  }
  0x15   :  { %s22_s16 = sshll.u32 %s1438_s15, 4  ;;  %s45_s18 = sshll.u32 %s1439_s17, 4  ;;  %s23_s16 = int_to_ptr.vmem [resolvable:$true] %s22_s16  ;;  %s46_s18 = int_to_ptr.vmem [resolvable:$true] %s45_s18 }
  0x16   :  { %s1339_s21 = scalar_lea.hbm %s1645_s0, 128 }
  0x17   :  { %p1340_p8 = scmp.ne.s32.totalorder %s1645_s0, %s1339_s21  ;;  %p1343_p9 = scmp.lt.u32.totalorder %s1339_s21, %s1645_s0 }
  0x19   :  { %p1345_p10 = pnand %p1343_p9, %p1340_p8 }
  0x1b   :  { %1348 = shalt.err (!%p1345_p10)
}
  0x1c   :  { %s1349_s1 = scalar_lea.vmem %s23_s16, 128  ;;  %p1354_p12 = scmp.lt.s32.totalorder %s23_s16, %s23_s16 }
  0x1d   :  { %p1350_p11 = scmp.ne.s32.totalorder %s23_s16, %s1349_s1  ;;  %p1355_p13 = scmp.lt.s32.totalorder %s1349_s1, %s1349_s1 }
  0x1f   :  { %p1356_p0 = por %p1355_p13, %p1354_p12 }
  0x21   :  { %p1357_p1 = pnand %p1356_p0, %p1350_p11 }
  0x23   :  { %1360 = shalt.err (!%p1357_p1)
}
  0x24   :  { %25 = dma.hbm_to_vmem [thread:$0]  %s1645_s0, 128, %s23_s16, [#allocation3]  }
  0x25   :  { %s1361_s30 = scalar_lea.hbm %s1648_s3, 6144 }
  0x26   :  { %p1362_p2 = scmp.ne.s32.totalorder %s1648_s3, %s1361_s30  ;;  %p1365_p3 = scmp.lt.u32.totalorder %s1361_s30, %s1648_s3 }
  0x28   :  { %p1367_p4 = pnand %p1365_p3, %p1362_p2 }
  0x2a   :  { %1370 = shalt.err (!%p1367_p4)
}
  0x2b   :  { %s1371_s14 = scalar_lea.vmem %s46_s18, 6144  ;;  %p1376_p6 = scmp.lt.s32.totalorder %s46_s18, %s46_s18 }
  0x2c   :  { %p1372_p5 = scmp.ne.s32.totalorder %s46_s18, %s1371_s14  ;;  %p1377_p7 = scmp.lt.s32.totalorder %s1371_s14, %s1371_s14 }
  0x2e   :  { %p1378_p8 = por %p1377_p7, %p1376_p6 }
  0x30   :  { %p1379_p9 = pnand %p1378_p8, %p1372_p5 }
  0x32   :  { %1382 = shalt.err (!%p1379_p9)
}
  0x33   :  { %51 = dma.hbm_to_vmem [thread:$0]  %s1648_s3, 6144, %s46_s18, [#allocation6], %s1436_s11, %s1436_s11, %s1437_s12  }
  0x34   :  { %s1440_s16 = smov [#allocation8]   ;;  %s1383_s21 = scalar_lea.hbm %s1650_s5, 2048 }
  0x35   :  { %s59_s17 = sshll.u32 %s1440_s16, 4  ;;  %p1384_p10 = scmp.ne.s32.totalorder %s1650_s5, %s1383_s21  ;;  %s60_s17 = int_to_ptr.vmem [resolvable:$true] %s59_s17 }
  0x36   :  { %p1387_p11 = scmp.lt.u32.totalorder %s1383_s21, %s1650_s5 }
  0x38   :  { %p1389_p12 = pnand %p1387_p11, %p1384_p10 }
  0x3a   :  { %1392 = shalt.err (!%p1389_p12)
}
  0x3b   :  { %s1393_s1 = scalar_lea.vmem %s60_s17, 2048  ;;  %p1398_p0 = scmp.lt.s32.totalorder %s60_s17, %s60_s17 }
  0x3c   :  { %p1394_p13 = scmp.ne.s32.totalorder %s60_s17, %s1393_s1  ;;  %p1399_p1 = scmp.lt.s32.totalorder %s1393_s1, %s1393_s1 }
  0x3e   :  { %p1400_p2 = por %p1399_p1, %p1398_p0 }
  0x40   :  { %p1401_p3 = pnand %p1400_p2, %p1394_p13 }
  0x42   :  { %1404 = shalt.err (!%p1401_p3)
}
  0x43   :  { %65 = dma.hbm_to_vmem [thread:$0]  %s1650_s5, 2048, %s60_s17, [#allocation9], %s1436_s11, %s1436_s11, %s1437_s12  }
  0x44   :  { %1427 = dma.done.wait [#allocation3], 128  }
  0x45   :  { %1428 = vsyncadd [#allocation3], 4294967168 }
  0x46   :  { %1429 = dma.done.wait [#allocation6], 12288  }
  0x47   :  { %1430 = vsyncadd [#allocation6], 4294955008 }
  0x48   :  { %1431 = dma.done.wait [#allocation9], 2048  }
  0x49   :  { %1432 = vsyncadd [#allocation9], 4294965248  ;;  %v1441_v0 = vmov 0.0|0.0   ;;  %vm1442_vm0 = vmmov 0   ;;  %v1443_v1 = vmov 0.0   ;;  %v81_v2 = vld [vmem:[#allocation5] sm:$0xff] }
  0x4a   :  { %1139 = vmatprep.subr.bf16.mxu0 %v1441_v0  ;;  %1163 = vmatprep.subr.bf16.mxu1 %v1441_v0  ;;  %v82_v3 = vld [vmem:[#allocation5 + $0x8] sm:$0xff]  ;;  %v175_v4 = vld [vmem:[#allocation7] sm:$0xff]  ;;  %v83_v7 = vld [vmem:[#allocation5 + $0x10] sm:$0xff]  ;;  %s1444_s15 = smov [#allocation10]  }
  0x4b   :  { %926 = vmatprep.mubr.msk.f32.mxu0 %vm1442_vm0, %v1443_v1  ;;  %961 = vmatprep.mubr.msk.f32.mxu1 %vm1442_vm0, %v1443_v1  ;;  %v1140_v5 = vpack.c.bf16 %v82_v3, %v81_v2  ;;  %v176_v6 = vld [vmem:[#allocation7 + $0x8] sm:$0xff]  ;;  %v84_v8 = vld [vmem:[#allocation5 + $0x18] sm:$0xff]  ;;  %v177_v10 = vld [vmem:[#allocation7 + $0x10] sm:$0xff]  ;;  %s753_s16 = sshll.u32 %s1444_s15, 4  ;;  %s754_s16 = int_to_ptr.vmem [resolvable:$true] %s753_s16 }
  0x4c   :  { %v1164_v9 = vpack.c.bf16 %v176_v6, %v175_v4  ;;  %v178_v11 = vld [vmem:[#allocation7 + $0x18] sm:$0xff]  ;;  %v1143_v12 = vpack.c.bf16 %v84_v8, %v83_v7  ;;  %v85_v14 = vld [vmem:[#allocation5 + $0x20] sm:$0xff]  ;;  %v86_v15 = vld [vmem:[#allocation5 + $0x28] sm:$0xff]  ;;  %p1410_p5 = scmp.lt.s32.totalorder %s754_s16, %s754_s16 }
  0x4d   :  { %1141 = vmatpush3.bf16.msra.mxu0 %v1140_v5  ;;  %v1167_v13 = vpack.c.bf16 %v178_v11, %v177_v10  ;;  %v179_v16 = vld [vmem:[#allocation7 + $0x20] sm:$0xff]  ;;  %v180_v17 = vld [vmem:[#allocation7 + $0x28] sm:$0xff]  ;;  %v1146_v18 = vpack.c.bf16 %v86_v15, %v85_v14  ;;  %v87_v20 = vld [vmem:[#allocation5 + $0x30] sm:$0xff] }
  0x4e   :  { %1165 = vmatpush3.bf16.msra.mxu1 %v1164_v9  ;;  %1142 = vmatprep.subr.bf16.mxu0 %v1441_v0  ;;  %v1170_v19 = vpack.c.bf16 %v180_v17, %v179_v16  ;;  %v88_v21 = vld [vmem:[#allocation5 + $0x38] sm:$0xff]  ;;  %v181_v22 = vld [vmem:[#allocation7 + $0x30] sm:$0xff]  ;;  %v89_v26 = vld [vmem:[#allocation5 + $0x40] sm:$0xff] }
  0x4f   :  { %1166 = vmatprep.subr.bf16.mxu1 %v1441_v0  ;;  %v182_v23 = vld [vmem:[#allocation7 + $0x38] sm:$0xff]  ;;  %v1149_v24 = vpack.c.bf16 %v88_v21, %v87_v20  ;;  %v90_v27 = vld [vmem:[#allocation5 + $0x48] sm:$0xff]  ;;  %v183_v28 = vld [vmem:[#allocation7 + $0x40] sm:$0xff] }
  0x50   :  { %v1173_v25 = vpack.c.bf16 %v182_v23, %v181_v22  ;;  %v184_v29 = vld [vmem:[#allocation7 + $0x48] sm:$0xff]  ;;  %v1152_v30 = vpack.c.bf16 %v90_v27, %v89_v26  ;;  %v91_v32 = vld [vmem:[#allocation5 + $0x50] sm:$0xff]  ;;  %v92_v33 = vld [vmem:[#allocation5 + $0x58] sm:$0xff] }
  0x51   :  { %1144 = vmatpush3.bf16.msra.mxu0 %v1143_v12  ;;  %v1176_v31 = vpack.c.bf16 %v184_v29, %v183_v28  ;;  %v185_v34 = vld [vmem:[#allocation7 + $0x50] sm:$0xff]  ;;  %v186_v35 = vld [vmem:[#allocation7 + $0x58] sm:$0xff]  ;;  %v1155_v36 = vpack.c.bf16 %v92_v33, %v91_v32  ;;  %v93_v38 = vld [vmem:[#allocation5 + $0x60] sm:$0xff] }
  0x52   :  { %1168 = vmatpush3.bf16.msra.mxu1 %v1167_v13  ;;  %1145 = vmatprep.subr.bf16.mxu0 %v1441_v0  ;;  %v1179_v37 = vpack.c.bf16 %v186_v35, %v185_v34  ;;  %v94_v39 = vld [vmem:[#allocation5 + $0x68] sm:$0xff]  ;;  %v187_v40 = vld [vmem:[#allocation7 + $0x60] sm:$0xff]  ;;  %v95_v44 = vld [vmem:[#allocation5 + $0x70] sm:$0xff] }
  0x53   :  { %1169 = vmatprep.subr.bf16.mxu1 %v1441_v0  ;;  %v188_v41 = vld [vmem:[#allocation7 + $0x68] sm:$0xff]  ;;  %v1158_v42 = vpack.c.bf16 %v94_v39, %v93_v38  ;;  %v96_v45 = vld [vmem:[#allocation5 + $0x78] sm:$0xff]  ;;  %v189_v46 = vld [vmem:[#allocation7 + $0x70] sm:$0xff] }
  0x54   :  { %v1182_v43 = vpack.c.bf16 %v188_v41, %v187_v40  ;;  %v190_v47 = vld [vmem:[#allocation7 + $0x78] sm:$0xff]  ;;  %v1161_v48 = vpack.c.bf16 %v96_v45, %v95_v44  ;;  %v270_v50 = vld [vmem:[#allocation5 + $0x80] sm:$0xff]  ;;  %v271_v51 = vld [vmem:[#allocation5 + $0x88] sm:$0xff] }
  0x55   :  { %1147 = vmatpush3.bf16.msra.mxu0 %v1146_v18  ;;  %v1185_v49 = vpack.c.bf16 %v190_v47, %v189_v46  ;;  %v366_v52 = vld [vmem:[#allocation7 + $0x80] sm:$0xff]  ;;  %v367_v53 = vld [vmem:[#allocation7 + $0x88] sm:$0xff]  ;;  %v80_v54 = vld [vmem:[#allocation2] sm:$0xff]  ;;  %v1188_v55 = vpack.c.bf16 %v271_v51, %v270_v50 }
  0x56   :  { %1171 = vmatpush3.bf16.msra.mxu1 %v1170_v19  ;;  %1148 = vmatprep.subr.bf16.mxu0 %v1441_v0  ;;  %v1212_v56 = vpack.c.bf16 %v367_v53, %v366_v52  ;;  %v272_v57 = vld [vmem:[#allocation5 + $0x90] sm:$0xff]  ;;  %v273_v58 = vld [vmem:[#allocation5 + $0x98] sm:$0xff]  ;;  %v274_v63 = vld [vmem:[#allocation5 + $0xa0] sm:$0xff] }
  0x57   :  { %1172 = vmatprep.subr.bf16.mxu1 %v1441_v0  ;;  %v368_v59 = vld [vmem:[#allocation7 + $0x90] sm:$0xff]  ;;  %v369_v60 = vld [vmem:[#allocation7 + $0x98] sm:$0xff]  ;;  %v1191_v61 = vpack.c.bf16 %v273_v58, %v272_v57  ;;  %v275_v2 = vld [vmem:[#allocation5 + $0xa8] sm:$0xff] }
  0x58   :  { %v1215_v62 = vpack.c.bf16 %v369_v60, %v368_v59  ;;  %v370_v3 = vld [vmem:[#allocation7 + $0xa0] sm:$0xff]  ;;  %v371_v4 = vld [vmem:[#allocation7 + $0xa8] sm:$0xff]  ;;  %v1194_v5 = vpack.c.bf16 %v275_v2, %v274_v63  ;;  %v276_v7 = vld [vmem:[#allocation5 + $0xb0] sm:$0xff] }
  0x59   :  { %1150 = vmatpush3.bf16.msra.mxu0 %v1149_v24  ;;  %v1218_v6 = vpack.c.bf16 %v371_v4, %v370_v3  ;;  %v277_v8 = vld [vmem:[#allocation5 + $0xb8] sm:$0xff]  ;;  %v372_v9 = vld [vmem:[#allocation7 + $0xb0] sm:$0xff]  ;;  %v278_v13 = vld [vmem:[#allocation5 + $0xc0] sm:$0xff] }
  0x5a   :  { %1174 = vmatpush3.bf16.msra.mxu1 %v1173_v25  ;;  %1151 = vmatprep.subr.bf16.mxu0 %v1441_v0  ;;  %v373_v10 = vld [vmem:[#allocation7 + $0xb8] sm:$0xff]  ;;  %v1197_v11 = vpack.c.bf16 %v277_v8, %v276_v7  ;;  %v279_v14 = vld [vmem:[#allocation5 + $0xc8] sm:$0xff]  ;;  %v374_v15 = vld [vmem:[#allocation7 + $0xc0] sm:$0xff] }
  0x5b   :  { %1175 = vmatprep.subr.bf16.mxu1 %v1441_v0  ;;  %v1221_v12 = vpack.c.bf16 %v373_v10, %v372_v9  ;;  %v375_v16 = vld [vmem:[#allocation7 + $0xc8] sm:$0xff]  ;;  %v1200_v17 = vpack.c.bf16 %v279_v14, %v278_v13  ;;  %v280_v19 = vld [vmem:[#allocation5 + $0xd0] sm:$0xff]  ;;  %v281_v20 = vld [vmem:[#allocation5 + $0xd8] sm:$0xff] }
  0x5c   :  { %v1224_v18 = vpack.c.bf16 %v375_v16, %v374_v15  ;;  %v376_v21 = vld [vmem:[#allocation7 + $0xd0] sm:$0xff]  ;;  %v377_v22 = vld [vmem:[#allocation7 + $0xd8] sm:$0xff]  ;;  %v1203_v23 = vpack.c.bf16 %v281_v20, %v280_v19  ;;  %v282_v25 = vld [vmem:[#allocation5 + $0xe0] sm:$0xff] }
  0x5d   :  { %1153 = vmatpush3.bf16.msra.mxu0 %v1152_v30  ;;  %v1227_v24 = vpack.c.bf16 %v377_v22, %v376_v21  ;;  %v283_v26 = vld [vmem:[#allocation5 + $0xe8] sm:$0xff]  ;;  %v378_v27 = vld [vmem:[#allocation7 + $0xe0] sm:$0xff]  ;;  %v285_v32 = vld [vmem:[#allocation5 + $0xf8] sm:$0xff] }
  0x5e   :  { %1177 = vmatpush3.bf16.msra.mxu1 %v1176_v31  ;;  %1154 = vmatprep.subr.bf16.mxu0 %v1441_v0  ;;  %v1206_v28 = vpack.c.bf16 %v283_v26, %v282_v25  ;;  %v379_v29 = vld [vmem:[#allocation7 + $0xe8] sm:$0xff]  ;;  %v284_v31 = vld [vmem:[#allocation5 + $0xf0] sm:$0xff]  ;;  %v381_v35 = vld [vmem:[#allocation7 + $0xf8] sm:$0xff] }
  0x5f   :  { %1178 = vmatprep.subr.bf16.mxu1 %v1441_v0  ;;  %v1230_v30 = vpack.c.bf16 %v379_v29, %v378_v27  ;;  %v380_v33 = vld [vmem:[#allocation7 + $0xf0] sm:$0xff]  ;;  %v1209_v34 = vpack.c.bf16 %v285_v32, %v284_v31  ;;  %v765_v38 = vld [vmem:[%s1649_s4] ss:$0 sm:$0xff]  ;;  %v462_v40 = vld [vmem:[#allocation5 + $0x100] sm:$0xff] }
  0x60   :  { %v463_v44 = vld [vmem:[#allocation5 + $0x108] sm:$0xff]  ;;  %v558_v45 = vld [vmem:[#allocation7 + $0x100] sm:$0xff]  ;;  %v464_v52 = vld [vmem:[#allocation5 + $0x110] sm:$0xff] }
  0x61   :  { %1156 = vmatpush3.bf16.msra.mxu0 %v1155_v36  ;;  %v1233_v36 = vpack.c.bf16 %v381_v35, %v380_v33  ;;  %v559_v46 = vld [vmem:[#allocation7 + $0x108] sm:$0xff]  ;;  %v1236_v50 = vpack.c.bf16 %v463_v44, %v462_v40  ;;  %v466_v59 = vld [vmem:[#allocation5 + $0x120] sm:$0xff]  ;;  %v468_v3 = vld [vmem:[#allocation5 + $0x130] sm:$0xff] }
  0x62   :  { %1180 = vmatpush3.bf16.msra.mxu1 %v1179_v37  ;;  %1157 = vmatprep.subr.bf16.mxu0 %v1441_v0  ;;  %v764_v37 = vld [vmem:[%s1647_s2] ss:$0 sm:$0xff]  ;;  %v1260_v51 = vpack.c.bf16 %v559_v46, %v558_v45  ;;  %v467_v60 = vld [vmem:[#allocation5 + $0x128] sm:$0xff]  ;;  %v470_v9 = vld [vmem:[#allocation5 + $0x140] sm:$0xff] }
  0x63   :  { %1181 = vmatprep.subr.bf16.mxu1 %v1441_v0  ;;  %v1242_v63 = vpack.c.bf16 %v467_v60, %v466_v59  ;;  %v469_v4 = vld [vmem:[#allocation5 + $0x138] sm:$0xff]  ;;  %v471_v10 = vld [vmem:[#allocation5 + $0x148] sm:$0xff]  ;;  %v472_v15 = vld [vmem:[#allocation5 + $0x150] sm:$0xff] }
  0x64   :  { %v1245_v7 = vpack.c.bf16 %v469_v4, %v468_v3  ;;  %v1248_v13 = vpack.c.bf16 %v471_v10, %v470_v9  ;;  %v473_v16 = vld [vmem:[#allocation5 + $0x158] sm:$0xff]  ;;  %v474_v21 = vld [vmem:[#allocation5 + $0x160] sm:$0xff]  ;;  %v475_v22 = vld [vmem:[#allocation5 + $0x168] sm:$0xff] }
  0x65   :  { %1159 = vmatpush3.bf16.msra.mxu0 %v1158_v42  ;;  %v1251_v19 = vpack.c.bf16 %v473_v16, %v472_v15  ;;  %v571_v25 = vld [vmem:[#allocation7 + $0x168] sm:$0xff]  ;;  %v476_v27 = vld [vmem:[#allocation5 + $0x170] sm:$0xff]  ;;  %v573_v31 = vld [vmem:[#allocation7 + $0x178] sm:$0xff] }
  0x66   :  { %1183 = vmatpush3.bf16.msra.mxu1 %v1182_v43  ;;  %1160 = vmatprep.subr.bf16.mxu0 %v1441_v0  ;;  %v572_v29 = vld [vmem:[#allocation7 + $0x170] sm:$0xff]  ;;  %v767_v33 = vld [vmem:[%s1647_s2 + $0x1] ss:$0 sm:$0xff]  ;;  %v653_v40 = vld [vmem:[#allocation8] sm:$0xff] }
  0x67   :  { %1184 = vmatprep.subr.bf16.mxu1 %v1441_v0  ;;  %v1281_v32 = vpack.c.bf16 %v573_v31, %v572_v29  ;;  %v769_v35 = vld [vmem:[%s1649_s4 + $0x1] ss:$0 sm:$0xff]  ;;  %v655_v46 = vld [vmem:[#allocation8 + $0x10] sm:$0xff]  ;;  %v665_v60 = vld [vmem:[#allocation8 + $0x60] sm:$0xff] }
  0x68   :  { %v771_v4 = vld [vmem:[%s1647_s2 + $0x2] ss:$0 sm:$0xff]  ;;  %s1405_s2 = scalar_lea.vmem %s754_s16, 128 }
  0x69   :  { %1162 = vmatpush3.bf16.msra.mxu0 %v1161_v48  ;;  %p1406_p4 = scmp.ne.s32.totalorder %s754_s16, %s1405_s2  ;;  %p1411_p6 = scmp.lt.s32.totalorder %s1405_s2, %s1405_s2 }
  0x6a   :  { %1186 = vmatpush3.bf16.msra.mxu1 %v1185_v49  ;;  %1187 = vmatprep.subr.bf16.mxu0 %v1441_v0 }
  0x6b   :  { %1211 = vmatprep.subr.bf16.mxu1 %v1441_v0  ;;  %p1412_p7 = por %p1411_p6, %p1410_p5 }
  0x6c   :  { %927 = vmatmul.mubr.f32.vlgmr.msra.gmra.mrb[0].mxu0 %v80_v54 }
  0x6d   :  { %962 = vmatmul.mubr.f32.vlgmr.msra.gmra.mrb[0].mxu1 %v80_v54  ;;  %1189 = vmatpush3.bf16.msra.mxu0 %v1188_v55  ;;  %v465_v54 = vld [vmem:[#allocation5 + $0x118] sm:$0xff]  ;;  %v560_v55 = vld [vmem:[#allocation7 + $0x110] sm:$0xff]  ;;  %p1413_p8 = pnand %p1412_p7, %p1406_p4 }
  0x6e   :  { %1213 = vmatpush3.bf16.msra.mxu1 %v1212_v56  ;;  %1190 = vmatprep.subr.bf16.mxu0 %v1441_v0  ;;  %v561_v56 = vld [vmem:[#allocation7 + $0x118] sm:$0xff]  ;;  %v1239_v57 = vpack.c.bf16 %v465_v54, %v464_v52  ;;  %v659_v52 = vld [vmem:[#allocation8 + $0x30] sm:$0xff] }
  0x6f   :  { %1214 = vmatprep.subr.bf16.mxu1 %v1441_v0  ;;  %996 = vmatprep.mubr.msk.f32.mxu0 %vm1442_vm0, %v1443_v1  ;;  %v1263_v58 = vpack.c.bf16 %v561_v56, %v560_v55  ;;  %v661_v55 = vld [vmem:[#allocation8 + $0x40] sm:$0xff]  ;;  %v662_v56 = vld [vmem:[#allocation8 + $0x48] sm:$0xff] }
  0x70   :  { %1031 = vmatprep.mubr.msk.f32.mxu1 %vm1442_vm0, %v1443_v1 }
  0x71   :  { %1192 = vmatpush3.bf16.msra.mxu0 %v1191_v61  ;;  %v562_v61 = vld [vmem:[#allocation7 + $0x120] sm:$0xff] }
  0x72   :  { %1216 = vmatpush3.bf16.msra.mxu1 %v1215_v62  ;;  %1193 = vmatprep.subr.bf16.mxu0 %v1441_v0  ;;  %v563_v62 = vld [vmem:[#allocation7 + $0x128] sm:$0xff] }
  0x73   :  { %1217 = vmatprep.subr.bf16.mxu1 %v1441_v0  ;;  %v1266_v2 = vpack.c.bf16 %v563_v62, %v562_v61  ;;  %v666_v61 = vld [vmem:[#allocation8 + $0x68] sm:$0xff] }
  0x74   :  { %v1302_v62 = vpack.c.bf16 %v666_v61, %v665_v60 }
  0x75   :  { %1195 = vmatpush3.bf16.msra.mxu0 %v1194_v5  ;;  %v564_v5 = vld [vmem:[#allocation7 + $0x130] sm:$0xff] }
  0x76   :  { %1219 = vmatpush3.bf16.msra.mxu1 %v1218_v6  ;;  %1196 = vmatprep.subr.bf16.mxu0 %v1441_v0  ;;  %v565_v6 = vld [vmem:[#allocation7 + $0x138] sm:$0xff] }
  0x77   :  { %1220 = vmatprep.subr.bf16.mxu1 %v1441_v0  ;;  %v1269_v8 = vpack.c.bf16 %v565_v6, %v564_v5  ;;  %v773_v6 = vld [vmem:[%s1649_s4 + $0x2] ss:$0 sm:$0xff] }
  0x79   :  { %1198 = vmatpush3.bf16.msra.mxu0 %v1197_v11  ;;  %v566_v11 = vld [vmem:[#allocation7 + $0x140] sm:$0xff] }
  0x7a   :  { %1222 = vmatpush3.bf16.msra.mxu1 %v1221_v12  ;;  %1199 = vmatprep.subr.bf16.mxu0 %v1441_v0  ;;  %v567_v12 = vld [vmem:[#allocation7 + $0x148] sm:$0xff] }
  0x7b   :  { %1223 = vmatprep.subr.bf16.mxu1 %v1441_v0  ;;  %v1272_v14 = vpack.c.bf16 %v567_v12, %v566_v11 }
  0x7d   :  { %1201 = vmatpush3.bf16.msra.mxu0 %v1200_v17  ;;  %v568_v17 = vld [vmem:[#allocation7 + $0x150] sm:$0xff] }
  0x7e   :  { %1225 = vmatpush3.bf16.msra.mxu1 %v1224_v18  ;;  %1202 = vmatprep.subr.bf16.mxu0 %v1441_v0  ;;  %v569_v18 = vld [vmem:[#allocation7 + $0x158] sm:$0xff] }
  0x7f   :  { %1226 = vmatprep.subr.bf16.mxu1 %v1441_v0  ;;  %v1275_v20 = vpack.c.bf16 %v569_v18, %v568_v17 }
  0x81   :  { %1204 = vmatpush3.bf16.msra.mxu0 %v1203_v23  ;;  %v570_v23 = vld [vmem:[#allocation7 + $0x160] sm:$0xff] }
  0x82   :  { %1228 = vmatpush3.bf16.msra.mxu1 %v1227_v24  ;;  %1205 = vmatprep.subr.bf16.mxu0 %v1441_v0  ;;  %v1254_v24 = vpack.c.bf16 %v475_v22, %v474_v21  ;;  %v1278_v26 = vpack.c.bf16 %v571_v25, %v570_v23 }
  0x83   :  { %1229 = vmatprep.subr.bf16.mxu1 %v1441_v0 }
  0x85   :  { %1207 = vmatpush3.bf16.msra.mxu0 %v1206_v28  ;;  %v477_v28 = vld [vmem:[#allocation5 + $0x178] sm:$0xff] }
  0x86   :  { %1231 = vmatpush3.bf16.msra.mxu1 %v1230_v30  ;;  %1208 = vmatprep.subr.bf16.mxu0 %v1441_v0  ;;  %v1257_v30 = vpack.c.bf16 %v477_v28, %v476_v27 }
  0x87   :  { %1232 = vmatprep.subr.bf16.mxu1 %v1441_v0 }
  0x89   :  { %1210 = vmatpush3.bf16.msra.mxu0 %v1209_v34 }
  0x8a   :  { %1234 = vmatpush3.bf16.msra.mxu1 %v1233_v36  ;;  %1235 = vmatprep.subr.bf16.mxu0 %v1441_v0 }
  0x8b   :  { %1259 = vmatprep.subr.bf16.mxu1 %v1441_v0 }
 0x13f   :  { %v170_v39 = vpop.f32.mrb[0].mxu0 }
 0x140   :  { %v171_v41 = vadd.f32 %v764_v37, %v170_v39  ;;  %v928_v42 = vpop.f32.mrb[1].mxu0  ;;  %v264_v43 = vpop.f32.mrb[0].mxu1 }
 0x141   :  { %v265_v47 = vadd.f32 %v765_v38, %v264_v43  ;;  %v963_v48 = vpop.f32.mrb[1].mxu1 }
 0x142   :  { %v174_v49 = vmax.f32 %v171_v41, 0.0  ;;  %v654_v41 = vld [vmem:[#allocation8 + $0x8] sm:$0xff] }
 0x143   :  { %v1284_v44 = vpack.c.bf16 %v654_v41, %v653_v40 }
 0x144   :  { %v268_v53 = vadd.f32 %v265_v47, %v174_v49  ;;  %v656_v47 = vld [vmem:[#allocation8 + $0x18] sm:$0xff]  ;;  %v657_v49 = vld [vmem:[#allocation8 + $0x20] sm:$0xff] }
 0x145   :  { %v1287_v48 = vpack.c.bf16 %v656_v47, %v655_v46 }
 0x146   :  { %997 = vmatmul.mubr.f32.vlgmr.msra.gmra.mrb[2].mxu0 %v268_v53  ;;  %1032 = vmatmul.mubr.f32.vlgmr.msra.gmra.mrb[2].mxu1 %v268_v53  ;;  %v660_v53 = vld [vmem:[#allocation8 + $0x38] sm:$0xff] }
 0x147   :  { %1237 = vmatpush3.bf16.msra.mxu0 %v1236_v50  ;;  %1261 = vmatpush3.bf16.msra.mxu1 %v1260_v51  ;;  %v658_v50 = vld [vmem:[#allocation8 + $0x28] sm:$0xff]  ;;  %v1293_v54 = vpack.c.bf16 %v660_v53, %v659_v52 }
 0x148   :  { %1238 = vmatprep.subr.bf16.mxu0 %v1441_v0  ;;  %1262 = vmatprep.subr.bf16.mxu1 %v1441_v0  ;;  %v1290_v51 = vpack.c.bf16 %v658_v50, %v657_v49 }
 0x149   :  { %1066 = vmatprep.mubr.msk.f32.mxu0 %vm1442_vm0, %v1443_v1  ;;  %1101 = vmatprep.mubr.msk.f32.mxu1 %vm1442_vm0, %v1443_v1 }
 0x14b   :  { %1240 = vmatpush3.bf16.msra.mxu0 %v1239_v57  ;;  %1264 = vmatpush3.bf16.msra.mxu1 %v1263_v58  ;;  %v1296_v57 = vpack.c.bf16 %v662_v56, %v661_v55  ;;  %v664_v58 = vld [vmem:[#allocation8 + $0x58] sm:$0xff] }
 0x14c   :  { %1241 = vmatprep.subr.bf16.mxu0 %v1441_v0  ;;  %1265 = vmatprep.subr.bf16.mxu1 %v1441_v0 }
 0x14f   :  { %1243 = vmatpush3.bf16.msra.mxu0 %v1242_v63  ;;  %1267 = vmatpush3.bf16.msra.mxu1 %v1266_v2  ;;  %v667_v63 = vld [vmem:[#allocation8 + $0x70] sm:$0xff]  ;;  %v668_v2 = vld [vmem:[#allocation8 + $0x78] sm:$0xff] }
 0x150   :  { %1244 = vmatprep.subr.bf16.mxu0 %v1441_v0  ;;  %1268 = vmatprep.subr.bf16.mxu1 %v1441_v0  ;;  %v1305_v3 = vpack.c.bf16 %v668_v2, %v667_v63 }
 0x153   :  { %1246 = vmatpush3.bf16.msra.mxu0 %v1245_v7  ;;  %1270 = vmatpush3.bf16.msra.mxu1 %v1269_v8 }
 0x154   :  { %1247 = vmatprep.subr.bf16.mxu0 %v1441_v0  ;;  %1271 = vmatprep.subr.bf16.mxu1 %v1441_v0 }
 0x157   :  { %1249 = vmatpush3.bf16.msra.mxu0 %v1248_v13  ;;  %1273 = vmatpush3.bf16.msra.mxu1 %v1272_v14  ;;  %v774_v13 = vld [vmem:[%s1651_s6] ss:$0 sm:$0xff] }
 0x158   :  { %1250 = vmatprep.subr.bf16.mxu0 %v1441_v0  ;;  %1274 = vmatprep.subr.bf16.mxu1 %v1441_v0 }
 0x15b   :  { %1252 = vmatpush3.bf16.msra.mxu0 %v1251_v19  ;;  %1276 = vmatpush3.bf16.msra.mxu1 %v1275_v20 }
 0x15c   :  { %1253 = vmatprep.subr.bf16.mxu0 %v1441_v0  ;;  %1277 = vmatprep.subr.bf16.mxu1 %v1441_v0 }
 0x15f   :  { %1255 = vmatpush3.bf16.msra.mxu0 %v1254_v24  ;;  %1279 = vmatpush3.bf16.msra.mxu1 %v1278_v26 }
 0x160   :  { %1256 = vmatprep.subr.bf16.mxu0 %v1441_v0  ;;  %1280 = vmatprep.subr.bf16.mxu1 %v1441_v0 }
 0x163   :  { %1258 = vmatpush3.bf16.msra.mxu0 %v1257_v30  ;;  %1282 = vmatpush3.bf16.msra.mxu1 %v1281_v32 }
 0x164   :  { %1283 = vmatprep.subr.bf16.mxu0 %v1441_v0 }
 0x219   :  { %v360_v34 = vpop.f32.mrb[2].mxu0  ;;  %v456_v36 = vpop.f32.mrb[2].mxu1 }
 0x21a   :  { %v361_v37 = vadd.f32 %v767_v33, %v360_v34  ;;  %v998_v38 = vpop.f32.mrb[3].mxu0  ;;  %v1033_v39 = vpop.f32.mrb[3].mxu1  ;;  %v457_v43 = vadd.f32 %v769_v35, %v456_v36 }
 0x21c   :  { %v364_v42 = vmax.f32 %v361_v37, 0.0 }
 0x21e   :  { %v460_v45 = vadd.f32 %v457_v43, %v364_v42 }
 0x220   :  { %1067 = vmatmul.mubr.f32.vlgmr.msra.gmra.mrb[4].mxu0 %v460_v45  ;;  %1102 = vmatmul.mubr.f32.vlgmr.msra.gmra.mrb[4].mxu1 %v460_v45 }
 0x221   :  { %1285 = vmatpush3.bf16.msra.mxu0 %v1284_v44  ;;  %1136 = vmatprep.mubr.msk.f32.mxu0 %vm1442_vm0, %v1443_v1  ;;  %v663_v1 = vld [vmem:[#allocation8 + $0x50] sm:$0xff] }
 0x222   :  { %1286 = vmatprep.subr.bf16.mxu0 %v1441_v0  ;;  %v1299_v59 = vpack.c.bf16 %v664_v58, %v663_v1 }
 0x225   :  { %1288 = vmatpush3.bf16.msra.mxu0 %v1287_v48 }
 0x226   :  { %1289 = vmatprep.subr.bf16.mxu0 %v1441_v0 }
 0x229   :  { %1291 = vmatpush3.bf16.msra.mxu0 %v1290_v51 }
 0x22a   :  { %1292 = vmatprep.subr.bf16.mxu0 %v1441_v0 }
 0x22d   :  { %1294 = vmatpush3.bf16.msra.mxu0 %v1293_v54 }
 0x22e   :  { %1295 = vmatprep.subr.bf16.mxu0 %v1441_v0 }
 0x231   :  { %1297 = vmatpush3.bf16.msra.mxu0 %v1296_v57 }
 0x232   :  { %1298 = vmatprep.subr.bf16.mxu0 %v1441_v0 }
 0x235   :  { %1300 = vmatpush3.bf16.msra.mxu0 %v1299_v59 }
 0x236   :  { %1301 = vmatprep.subr.bf16.mxu0 %v1441_v0 }
 0x239   :  { %1303 = vmatpush3.bf16.msra.mxu0 %v1302_v62 }
 0x23a   :  { %1304 = vmatprep.subr.bf16.mxu0 %v1441_v0 }
 0x23d   :  { %1306 = vmatpush3.bf16.msra.mxu0 %v1305_v3 }
 0x2f3   :  { %v552_v5 = vpop.f32.mrb[4].mxu0  ;;  %v648_v7 = vpop.f32.mrb[4].mxu1 }
 0x2f4   :  { %v553_v8 = vadd.f32 %v771_v4, %v552_v5  ;;  %v1068_v9 = vpop.f32.mrb[5].mxu0  ;;  %v1103_v10 = vpop.f32.mrb[5].mxu1  ;;  %v649_v12 = vadd.f32 %v773_v6, %v648_v7 }
 0x2f6   :  { %v556_v11 = vmax.f32 %v553_v8, 0.0 }
 0x2f8   :  { %v652_v0 = vadd.f32 %v649_v12, %v556_v11 }
 0x2fa   :  { %1137 = vmatmul.mubr.f32.vlgmr.msra.gmra.mrb[6].mxu0 %v652_v0 }
 0x3cd   :  { %v742_v14 = vpop.f32.mrb[6].mxu0 }
 0x3ce   :  { %v743_v15 = vadd.f32 %v774_v13, %v742_v14  ;;  %v1138_v16 = vpop.f32.mrb[7].mxu0 }
 0x3d0   :  { %746 = vst [vmem:[#allocation10] sm:$0xff] %v743_v15 }
 0x3d1   :  { %1416 = shalt.err (!%p1413_p8)
}
 0x3d2   :  { %s1417_s19 = scalar_lea.hbm %s1652_s7, 128 }
 0x3d3   :  { %p1418_p9 = scmp.ne.s32.totalorder %s1652_s7, %s1417_s19  ;;  %p1421_p10 = scmp.lt.u32.totalorder %s1417_s19, %s1652_s7 }
 0x3d5   :  { %p1423_p11 = pnand %p1421_p10, %p1418_p9 }
 0x3d7   :  { %1426 = shalt.err (!%p1423_p11)
}
 0x3d8   :  { %756 = dma.vmem_to_hbm [thread:$0]  %s754_s16, 128, %s1652_s7, [#allocation4]  }
 0x3d9   :  { %1433 = dma.done.wait [#allocation4], 128  }
 0x3da   :  { %1434 = vsyncadd [#allocation4], 4294967168 }
 0x3db   :  { %760 = vsyncpa [#allocation3], 1 }
 0x3dc   :  { %761 = vsyncpa [#allocation6], 1 }
 0x3dd   :  { %762 = vsyncpa [#allocation9], 1 }
 0x3de   :  { %763 = vsyncpa [#allocation4], 1 }

</bundles_post_ra>
